<compile_context>
chip_gen: v6e
topology: v6e:2x2x1
jax: 0.10.0
libtpu: 0.0.40
codegen_flags: <defaults>
</compile_context>

<pallas_src>
import math
import functools

import numpy as np
import jax
import jax.numpy as jnp
from jax import lax
from jax.experimental import pallas as pl
from jax.experimental.pallas import tpu as pltpu

_LANE = 128


def _purity_kernel(cam_ref, grid_ref, out_ref, *,
                   k_size, purity_t, w_valid, mask_lanes):
    """One batch-block: purity-entropy map + masked full-map softmax.

    cam_ref : (Bt, C, H, Wp)  raw CAM scores (any float dtype)
    grid_ref: (Bt, H, Wp)     selection grid (0 == masked out; padded cols are 0)
    out_ref : (Bt, H, Wp) f32 softmax(purity * purity_t) over each (H, W) map
    """
    p = k_size // 2
    cam = cam_ref[...].astype(jnp.float32)       # cast after load (bf16-friendly)
    gmap = grid_ref[...].astype(jnp.float32)
    Bt, C, H, Wp = cam.shape

    # Channel normalization with the synthesized constant-0.4 background score:
    #   channel_sum = sum_c cam[c] + 0.4 ;  norm[c] = cam[c] / channel_sum
    # The bg channel itself is never materialized (its box sum is analytic).
    inv_sum = pl.reciprocal(jnp.sum(cam, axis=1) + jnp.float32(0.4))   # (Bt,H,Wp)
    norm3 = (cam * inv_sum[:, None]).reshape(Bt * C, H, Wp)            # merge leading dims

    # Hoisted 2-D iotas shared by every shift and by the analytic window size.
    row = lax.broadcasted_iota(jnp.int32, (H, Wp), 0)
    col = lax.broadcasted_iota(jnp.int32, (H, Wp), 1)
    shifts = [d for d in range(-p, p + 1) if d != 0]
    row_masks = {di: (row + di >= 0) & (row + di < H) for di in shifts}
    col_masks = ({dj: (col + dj >= 0) & (col + dj < w_valid) for dj in shifts}
                 if mask_lanes else None)

    # ---- separable zero-padded k x k box sum over the C real channels ----
    # W (lane) pass: with pad >= p, lane rolls wrap into zero columns -> no masks.
    acc = norm3
    for dj in shifts:
        shifted = pltpu.roll(norm3, shift=(-dj) % Wp, axis=2)
        if mask_lanes:
            shifted = jnp.where(col_masks[dj], shifted, jnp.float32(0.0))
        acc = acc + shifted
    # H (sublane) pass: rolls wrap real rows -> keep hoisted row-validity masks.
    summary3 = acc
    for di in shifts:
        shifted = pltpu.roll(acc, shift=(-di) % H, axis=1)
        summary3 = summary3 + jnp.where(row_masks[di], shifted, jnp.float32(0.0))
    summary = summary3.reshape(Bt, C, H, Wp)

    # ---- analytic count & bg summary ----
    cw = jnp.minimum(col + p, w_valid - 1) - jnp.maximum(col - p, 0) + 1
    ch = jnp.minimum(row + p, H - 1) - jnp.maximum(row - p, 0) + 1
    count = jnp.maximum(cw * ch, 1).astype(jnp.float32)                # (H,Wp)
    inv_count = pl.reciprocal(count)

    sum_c = jnp.sum(summary, axis=1)                                   # (Bt,H,Wp)
    summary_bg = count - sum_c                                         # == box_sum(norm_bg)

    # ---- per-pixel channel distribution + entropy ("purity") ----
    eps = jnp.float32(1e-6)
    dist = summary * inv_count                                         # (Bt,C,H,Wp)
    dist_bg = summary_bg * inv_count                                   # (Bt,H,Wp)
    ent = (jnp.sum(-dist * jnp.log(dist + eps), axis=1)
           - dist_bg * jnp.log(dist_bg + eps))
    purity = ent * jnp.float32(1.0 / math.log(C + 1))                  # (Bt,H,Wp)

    # ---- mask grid==0 pixels, exclude padded columns, softmax per map ----
    pixel = jnp.where(gmap == jnp.float32(0.0), jnp.float32(-10000.0), purity)
    z = pixel * jnp.float32(purity_t)
    if Wp > w_valid:
        # Padded columns must never contribute to the softmax, for any purity_t.
        z = jnp.where(col < w_valid, z, jnp.float32(-1e30))
    m = jnp.max(jnp.max(z, axis=2, keepdims=True), axis=1, keepdims=True)
    e = jnp.exp(z - m)
    s = jnp.sum(jnp.sum(e, axis=2, keepdims=True), axis=1, keepdims=True)
    out_ref[...] = e * pl.reciprocal(s)


def _purity_side(cam, gmap, *, k_size, purity_t):
    """Run one side (fg or bg). Returns the (B, H, W) pixel-weight map."""
    B, C, H, W = cam.shape
    p = k_size // 2
    W_pad = -(-W // _LANE) * _LANE
    pad_w = W_pad - W
    # If the zero pad is narrower than the filter radius (e.g. W already a
    # multiple of 128), lane rolls would wrap real columns -> keep in-kernel masks.
    mask_lanes = pad_w < p

    if pad_w:
        cam = jnp.pad(cam, ((0, 0), (0, 0), (0, 0), (0, pad_w)))
        gmap = jnp.pad(gmap, ((0, 0), (0, 0), (0, pad_w)))

    # Batch-block the grid: amortize per-step pipeline overhead while keeping the
    # double-buffered blocks + in-kernel temporaries under a conservative VMEM
    # budget (safe for v5e's 16 MiB default scoped limit). Keep >= 2 grid steps
    # when possible so both v7x TensorCores get work under "parallel" semantics.
    per_b = 8 * C * H * W_pad * 4 + 8 * H * W_pad * 4
    budget = 10 * 1024 * 1024
    bt = max(1, min(B, budget // max(per_b, 1)))
    if B >= 2:
        bt = max(1, min(bt, B // 2))
    while B % bt:
        bt -= 1
    # TODO(synk): for production-size maps (large C*H*W) add a channel-chunk grid
    # axis accumulating sum_c(summary) / the entropy partial sums so a single
    # block never exceeds v7x's 64 MiB VMEM.

    kernel = functools.partial(
        _purity_kernel, k_size=int(k_size), purity_t=float(purity_t),
        w_valid=int(W), mask_lanes=bool(mask_lanes))

    cam_spec = pl.BlockSpec((bt, C, H, W_pad), lambda b: (b, 0, 0, 0))
    map_spec = pl.BlockSpec((bt, H, W_pad), lambda b: (b, 0, 0))

    out = pl.pallas_call(
        kernel,
        out_shape=jax.ShapeDtypeStruct((B, H, W_pad), jnp.float32),
        grid_spec=pltpu.PrefetchScalarGridSpec(
            num_scalar_prefetch=0,
            grid=(B // bt,),
            in_specs=[cam_spec, map_spec],
            out_specs=map_spec,
        ),
        compiler_params=pltpu.CompilerParams(
            dimension_semantics=("parallel",)),
    )(cam, gmap)
    return out[:, :, :W] if pad_w else out


def pixel_purity(fg_cam, fg_grid, bg_cam, bg_grid, *, k_size=3, purity_t=1.0):
    """Forward pass of Pixel_Purity. Returns (fg_pixel_weight, bg_pixel_weight).

    CAMs are accepted in their native dtype (e.g. bf16) and cast to f32 only
    after the block load inside the kernel. fg/bg run as two independent
    pallas_calls so the dominant CAM tensors are never concatenated in HBM.
    """
    assert k_size % 2 == 1, "odd k_size assumed (same-size depthwise conv)"
    fg = _purity_side(fg_cam, fg_grid, k_size=k_size, purity_t=purity_t)
    bg = _purity_side(bg_cam, bg_grid, k_size=k_size, purity_t=purity_t)
    return fg, bg


def _reference(fg_cam, fg_grid, bg_cam, bg_grid, k_size, purity_t):
    """Pure-JAX reference mirroring the PyTorch forward (for sanity checking)."""
    B, C, H, W = fg_cam.shape
    bg_score = jnp.full((B, 1, H, W), 0.4, jnp.float32)
    p = k_size // 2

    def side(cam, grid):
        cam = jnp.concatenate([cam.astype(jnp.float32), bg_score], axis=1)
        cam = cam / jnp.sum(cam, axis=1, keepdims=True)
        padded = jnp.pad(cam, ((0, 0), (0, 0), (p, p), (p, p)))
        summary = jnp.zeros_like(cam)
        for u in range(k_size):
            for v in range(k_size):
                summary = summary + padded[:, :, u:u + H, v:v + W]
        count = jnp.sum(summary, axis=1, keepdims=True)
        dist = summary / count
        purity = jnp.sum(-dist * jnp.log(dist + 1e-6), axis=1) / math.log(C + 1)
        pixel = jnp.where(grid == 0, -10000.0, purity)
        return jax.nn.softmax((pixel * purity_t).reshape(B, -1),
                              axis=-1).reshape(B, H, W)

    return side(fg_cam, fg_grid), side(bg_cam, bg_grid)


if __name__ == "__main__":
    # small shapes: batch=2, nb_classes=4, spatial=16x16, k_size=3, purity_t=1.0
    B, C, H, W = 2, 4, 16, 16
    K_SIZE, PURITY_T = 3, 1.0

    key = jax.random.PRNGKey(0)
    k1, k2, k3, k4 = jax.random.split(key, 4)
    fg_cam = jax.random.uniform(k1, (B, C, H, W), jnp.float32, 0.05, 1.0)
    bg_cam = jax.random.uniform(k2, (B, C, H, W), jnp.float32, 0.05, 1.0)
    fg_grid = jax.random.bernoulli(k3, 0.7, (B, H, W)).astype(jnp.float32)
    bg_grid = jax.random.bernoulli(k4, 0.7, (B, H, W)).astype(jnp.float32)

    fg_w, bg_w = pixel_purity(fg_cam, fg_grid, bg_cam, bg_grid,
                              k_size=K_SIZE, purity_t=PURITY_T)
    jax.block_until_ready((fg_w, bg_w))

    fg_ref, bg_ref = _reference(fg_cam, fg_grid, bg_cam, bg_grid,
                                K_SIZE, PURITY_T)
    np.testing.assert_allclose(np.asarray(fg_w), np.asarray(fg_ref),
                               rtol=1e-5, atol=1e-6)
    np.testing.assert_allclose(np.asarray(bg_w), np.asarray(bg_ref),
                               rtol=1e-5, atol=1e-6)
    print("KERNEL_OK")
</pallas_src>

<mosaic_0001>
module attributes {stable_mosaic.version = 11 : i64} {
  func.func @_purity_kernel(%arg0: i32, %arg1: memref<1x4x16x128xf32, #tpu.memory_space<vmem>>, %arg2: memref<1x16x128xf32, #tpu.memory_space<vmem>>, %arg3: memref<1x16x128xf32, #tpu.memory_space<vmem>>) attributes {dimension_semantics = [#tpu.dimension_semantics<parallel>], iteration_bounds = array<i64: 2>, scalar_prefetch = 0 : i64, scratch_operands = 0 : i64, tpu.core_type = #tpu.core_type<tc>, window_params = [{transform_indices = @transform_0, window_bounds = array<i64: 1, 4, 16, 128>}, {transform_indices = @transform_1, window_bounds = array<i64: 1, 16, 128>}, {transform_indices = @transform_2, window_bounds = array<i64: 1, 16, 128>}]} {
    %c0 = arith.constant 0 : index
    %c0_0 = arith.constant 0 : index
    %c0_1 = arith.constant 0 : index
    %c0_2 = arith.constant 0 : index
    %0 = vector.load %arg1[%c0, %c0_0, %c0_1, %c0_2] : memref<1x4x16x128xf32, #tpu.memory_space<vmem>>, vector<1x4x16x128xf32>
    %c0_3 = arith.constant 0 : index
    %c0_4 = arith.constant 0 : index
    %c0_5 = arith.constant 0 : index
    %1 = vector.load %arg2[%c0_3, %c0_4, %c0_5] : memref<1x16x128xf32, #tpu.memory_space<vmem>>, vector<1x16x128xf32>
    %cst = arith.constant dense<0.000000e+00> : vector<1x16x128xf32>
    %2 = vector.multi_reduction <add>, %0, %cst [1] : vector<1x4x16x128xf32> to vector<1x16x128xf32>
    %cst_6 = arith.constant 4.000000e-01 : f32
    %3 = vector.broadcast %cst_6 : f32 to vector<1x16x128xf32>
    %4 = arith.addf %2, %3 : vector<1x16x128xf32>
    %5 = tpu.reciprocal %4 : vector<1x16x128xf32> -> vector<1x16x128xf32>
    %6 = vector.shape_cast %5 : vector<1x16x128xf32> to vector<1x1x16x128xf32>
    %7 = vector.broadcast %6 : vector<1x1x16x128xf32> to vector<1x4x16x128xf32>
    %8 = arith.mulf %0, %7 : vector<1x4x16x128xf32>
    %9 = vector.shape_cast %8 : vector<1x4x16x128xf32> to vector<4x16x128xf32>
    %10 = tpu.iota {dimensions = array<i32: 0>} : vector<16x128xi32>
    %11 = tpu.iota {dimensions = array<i32: 1>} : vector<16x128xi32>
    %c-1_i32 = arith.constant -1 : i32
    %12 = vector.broadcast %c-1_i32 : i32 to vector<16x128xi32>
    %13 = arith.addi %10, %12 : vector<16x128xi32>
    %c0_i32 = arith.constant 0 : i32
    %14 = vector.broadcast %c0_i32 : i32 to vector<16x128xi32>
    %15 = arith.cmpi sge, %13, %14 : vector<16x128xi32>
    %c-1_i32_7 = arith.constant -1 : i32
    %16 = vector.broadcast %c-1_i32_7 : i32 to vector<16x128xi32>
    %17 = arith.addi %10, %16 : vector<16x128xi32>
    %c16_i32 = arith.constant 16 : i32
    %18 = vector.broadcast %c16_i32 : i32 to vector<16x128xi32>
    %19 = arith.cmpi slt, %17, %18 : vector<16x128xi32>
    %20 = arith.andi %15, %19 : vector<16x128xi1>
    %c1_i32 = arith.constant 1 : i32
    %21 = vector.broadcast %c1_i32 : i32 to vector<16x128xi32>
    %22 = arith.addi %10, %21 : vector<16x128xi32>
    %c0_i32_8 = arith.constant 0 : i32
    %23 = vector.broadcast %c0_i32_8 : i32 to vector<16x128xi32>
    %24 = arith.cmpi sge, %22, %23 : vector<16x128xi32>
    %c1_i32_9 = arith.constant 1 : i32
    %25 = vector.broadcast %c1_i32_9 : i32 to vector<16x128xi32>
    %26 = arith.addi %10, %25 : vector<16x128xi32>
    %c16_i32_10 = arith.constant 16 : i32
    %27 = vector.broadcast %c16_i32_10 : i32 to vector<16x128xi32>
    %28 = arith.cmpi slt, %26, %27 : vector<16x128xi32>
    %29 = arith.andi %24, %28 : vector<16x128xi1>
    %c1_i32_11 = arith.constant 1 : i32
    %30 = tpu.dynamic_rotate %9 by %c1_i32_11 dim 2 : vector<4x16x128xf32>, i32 -> vector<4x16x128xf32>
    %31 = arith.addf %9, %30 : vector<4x16x128xf32>
    %c127_i32 = arith.constant 127 : i32
    %32 = tpu.dynamic_rotate %9 by %c127_i32 dim 2 : vector<4x16x128xf32>, i32 -> vector<4x16x128xf32>
    %33 = arith.addf %31, %32 : vector<4x16x128xf32>
    %c1_i32_12 = arith.constant 1 : i32
    %34 = tpu.dynamic_rotate %33 by %c1_i32_12 dim 1 : vector<4x16x128xf32>, i32 -> vector<4x16x128xf32>
    %cst_13 = arith.constant 0.000000e+00 : f32
    %35 = vector.shape_cast %20 : vector<16x128xi1> to vector<1x16x128xi1>
    %36 = vector.broadcast %35 : vector<1x16x128xi1> to vector<4x16x128xi1>
    %37 = vector.broadcast %cst_13 : f32 to vector<4x16x128xf32>
    %38 = arith.select %36, %34, %37 : vector<4x16x128xi1>, vector<4x16x128xf32>
    %39 = arith.addf %33, %38 : vector<4x16x128xf32>
    %c15_i32 = arith.constant 15 : i32
    %40 = tpu.dynamic_rotate %33 by %c15_i32 dim 1 : vector<4x16x128xf32>, i32 -> vector<4x16x128xf32>
    %cst_14 = arith.constant 0.000000e+00 : f32
    %41 = vector.shape_cast %29 : vector<16x128xi1> to vector<1x16x128xi1>
    %42 = vector.broadcast %41 : vector<1x16x128xi1> to vector<4x16x128xi1>
    %43 = vector.broadcast %cst_14 : f32 to vector<4x16x128xf32>
    %44 = arith.select %42, %40, %43 : vector<4x16x128xi1>, vector<4x16x128xf32>
    %45 = arith.addf %39, %44 : vector<4x16x128xf32>
    %46 = vector.shape_cast %45 : vector<4x16x128xf32> to vector<1x4x16x128xf32>
    %c1_i32_15 = arith.constant 1 : i32
    %47 = vector.broadcast %c1_i32_15 : i32 to vector<16x128xi32>
    %48 = arith.addi %11, %47 : vector<16x128xi32>
    %c15_i32_16 = arith.constant 15 : i32
    %49 = vector.broadcast %c15_i32_16 : i32 to vector<16x128xi32>
    %50 = arith.minsi %48, %49 : vector<16x128xi32>
    %c1_i32_17 = arith.constant 1 : i32
    %51 = vector.broadcast %c1_i32_17 : i32 to vector<16x128xi32>
    %52 = arith.subi %11, %51 : vector<16x128xi32>
    %c0_i32_18 = arith.constant 0 : i32
    %53 = vector.broadcast %c0_i32_18 : i32 to vector<16x128xi32>
    %54 = arith.maxsi %52, %53 : vector<16x128xi32>
    %55 = arith.subi %50, %54 : vector<16x128xi32>
    %c1_i32_19 = arith.constant 1 : i32
    %56 = vector.broadcast %c1_i32_19 : i32 to vector<16x128xi32>
    %57 = arith.addi %55, %56 : vector<16x128xi32>
    %c1_i32_20 = arith.constant 1 : i32
    %58 = vector.broadcast %c1_i32_20 : i32 to vector<16x128xi32>
    %59 = arith.addi %10, %58 : vector<16x128xi32>
    %c15_i32_21 = arith.constant 15 : i32
    %60 = vector.broadcast %c15_i32_21 : i32 to vector<16x128xi32>
    %61 = arith.minsi %59, %60 : vector<16x128xi32>
    %c1_i32_22 = arith.constant 1 : i32
    %62 = vector.broadcast %c1_i32_22 : i32 to vector<16x128xi32>
    %63 = arith.subi %10, %62 : vector<16x128xi32>
    %c0_i32_23 = arith.constant 0 : i32
    %64 = vector.broadcast %c0_i32_23 : i32 to vector<16x128xi32>
    %65 = arith.maxsi %63, %64 : vector<16x128xi32>
    %66 = arith.subi %61, %65 : vector<16x128xi32>
    %c1_i32_24 = arith.constant 1 : i32
    %67 = vector.broadcast %c1_i32_24 : i32 to vector<16x128xi32>
    %68 = arith.addi %66, %67 : vector<16x128xi32>
    %69 = arith.muli %57, %68 : vector<16x128xi32>
    %c1_i32_25 = arith.constant 1 : i32
    %70 = vector.broadcast %c1_i32_25 : i32 to vector<16x128xi32>
    %71 = arith.maxsi %69, %70 : vector<16x128xi32>
    %72 = arith.sitofp %71 : vector<16x128xi32> to vector<16x128xf32>
    %73 = tpu.reciprocal %72 : vector<16x128xf32> -> vector<16x128xf32>
    %cst_26 = arith.constant dense<0.000000e+00> : vector<1x16x128xf32>
    %74 = vector.multi_reduction <add>, %46, %cst_26 [1] : vector<1x4x16x128xf32> to vector<1x16x128xf32>
    %75 = vector.shape_cast %72 : vector<16x128xf32> to vector<1x16x128xf32>
    %76 = arith.subf %75, %74 : vector<1x16x128xf32>
    %77 = vector.shape_cast %73 : vector<16x128xf32> to vector<1x1x16x128xf32>
    %78 = vector.broadcast %77 : vector<1x1x16x128xf32> to vector<1x4x16x128xf32>
    %79 = arith.mulf %46, %78 : vector<1x4x16x128xf32>
    %80 = vector.shape_cast %73 : vector<16x128xf32> to vector<1x16x128xf32>
    %81 = arith.mulf %76, %80 : vector<1x16x128xf32>
    %cst_27 = arith.constant 0.000000e+00 : f32
    %82 = vector.broadcast %cst_27 : f32 to vector<1x4x16x128xf32>
    %83 = arith.subf %82, %79 : vector<1x4x16x128xf32>
    %cst_28 = arith.constant 9.99999997E-7 : f32
    %84 = vector.broadcast %cst_28 : f32 to vector<1x4x16x128xf32>
    %85 = arith.addf %79, %84 : vector<1x4x16x128xf32>
    %86 = math.log %85 : vector<1x4x16x128xf32>
    %87 = arith.mulf %83, %86 : vector<1x4x16x128xf32>
    %cst_29 = arith.constant dense<0.000000e+00> : vector<1x16x128xf32>
    %88 = vector.multi_reduction <add>, %87, %cst_29 [1] : vector<1x4x16x128xf32> to vector<1x16x128xf32>
    %cst_30 = arith.constant 9.99999997E-7 : f32
    %89 = vector.broadcast %cst_30 : f32 to vector<1x16x128xf32>
    %90 = arith.addf %81, %89 : vector<1x16x128xf32>
    %91 = math.log %90 : vector<1x16x128xf32>
    %92 = arith.mulf %81, %91 : vector<1x16x128xf32>
    %93 = arith.subf %88, %92 : vector<1x16x128xf32>
    %cst_31 = arith.constant 0.62133491 : f32
    %94 = vector.broadcast %cst_31 : f32 to vector<1x16x128xf32>
    %95 = arith.mulf %93, %94 : vector<1x16x128xf32>
    %cst_32 = arith.constant 0.000000e+00 : f32
    %96 = vector.broadcast %cst_32 : f32 to vector<1x16x128xf32>
    %97 = arith.cmpf oeq, %1, %96 : vector<1x16x128xf32>
    %cst_33 = arith.constant -1.000000e+04 : f32
    %98 = vector.broadcast %cst_33 : f32 to vector<1x16x128xf32>
    %99 = arith.select %97, %98, %95 : vector<1x16x128xi1>, vector<1x16x128xf32>
    %cst_34 = arith.constant 1.000000e+00 : f32
    %100 = vector.broadcast %cst_34 : f32 to vector<1x16x128xf32>
    %101 = arith.mulf %99, %100 : vector<1x16x128xf32>
    %c16_i32_35 = arith.constant 16 : i32
    %102 = vector.broadcast %c16_i32_35 : i32 to vector<16x128xi32>
    %103 = arith.cmpi slt, %11, %102 : vector<16x128xi32>
    %cst_36 = arith.constant -1.000000e+30 : f32
    %104 = vector.shape_cast %103 : vector<16x128xi1> to vector<1x16x128xi1>
    %105 = vector.broadcast %cst_36 : f32 to vector<1x16x128xf32>
    %106 = arith.select %104, %101, %105 : vector<1x16x128xi1>, vector<1x16x128xf32>
    %cst_37 = arith.constant dense<0xFF800000> : vector<1x16xf32>
    %107 = vector.multi_reduction <maximumf>, %106, %cst_37 [2] : vector<1x16x128xf32> to vector<1x16xf32>
    %108 = vector.shape_cast %107 : vector<1x16xf32> to vector<1x16x1xf32>
    %cst_38 = arith.constant dense<0xFF800000> : vector<1x1xf32>
    %109 = vector.multi_reduction <maximumf>, %108, %cst_38 [1] : vector<1x16x1xf32> to vector<1x1xf32>
    %110 = vector.shape_cast %109 : vector<1x1xf32> to vector<1x1x1xf32>
    %111 = vector.broadcast %110 : vector<1x1x1xf32> to vector<1x16x128xf32>
    %112 = arith.subf %106, %111 : vector<1x16x128xf32>
    %113 = math.exp %112 : vector<1x16x128xf32>
    %cst_39 = arith.constant dense<0.000000e+00> : vector<1x16xf32>
    %114 = vector.multi_reduction <add>, %113, %cst_39 [2] : vector<1x16x128xf32> to vector<1x16xf32>
    %115 = vector.shape_cast %114 : vector<1x16xf32> to vector<1x16x1xf32>
    %cst_40 = arith.constant dense<0.000000e+00> : vector<1x1xf32>
    %116 = vector.multi_reduction <add>, %115, %cst_40 [1] : vector<1x16x1xf32> to vector<1x1xf32>
    %117 = vector.shape_cast %116 : vector<1x1xf32> to vector<1x1x1xf32>
    %118 = tpu.reciprocal %117 : vector<1x1x1xf32> -> vector<1x1x1xf32>
    %119 = vector.broadcast %118 : vector<1x1x1xf32> to vector<1x16x128xf32>
    %120 = arith.mulf %113, %119 : vector<1x16x128xf32>
    %c0_41 = arith.constant 0 : index
    %c0_42 = arith.constant 0 : index
    %c0_43 = arith.constant 0 : index
    %121 = vector.load %arg3[%c0_41, %c0_42, %c0_43] : memref<1x16x128xf32, #tpu.memory_space<vmem>>, vector<1x16x128xf32>
    tpu.vector_store %arg3[%c0_41, %c0_42, %c0_43], %120 {strides = array<i32>} : memref<1x16x128xf32, #tpu.memory_space<vmem>>, vector<1x16x128xf32>,
    return
  }
  func.func @transform_0(%arg0: i32) -> (i32, i32, i32, i32) {
    %c0_i32 = arith.constant 0 : i32
    %c0_i32_0 = arith.constant 0 : i32
    %c0_i32_1 = arith.constant 0 : i32
    %c0_i32_2 = arith.constant 0 : i32
    return %arg0, %c0_i32, %c0_i32_0, %c0_i32_1 : i32, i32, i32, i32
  }
  func.func @transform_1(%arg0: i32) -> (i32, i32, i32) {
    %c0_i32 = arith.constant 0 : i32
    %c0_i32_0 = arith.constant 0 : i32
    %c0_i32_1 = arith.constant 0 : i32
    return %arg0, %c0_i32, %c0_i32_0 : i32, i32, i32
  }
  func.func @transform_2(%arg0: i32) -> (i32, i32, i32) {
    %c0_i32 = arith.constant 0 : i32
    %c0_i32_0 = arith.constant 0 : i32
    %c0_i32_1 = arith.constant 0 : i32
    return %arg0, %c0_i32, %c0_i32_0 : i32, i32, i32
  }
}

</mosaic_0001>

<bundles_post_ra>
// kernel: tpu_custom_call.1
= control target key start
LH: loop header
LB: loop body
LE: loop exit
PB: predicated region body
PF: predicated region fallthrough
CT: control target
= control target key end

     0   :  { %7 = vsyncpa [#allocation3], 0  ;;  %s1274_s0 = inlined_call_operand.hbm [shape: f32[2,4,16,128], index: 0, kind: input, shape index: {}]   ;;  %s1275_s1 = inlined_call_operand.hbm [shape: f32[2,16,128], index: 1, kind: input, shape index: {}]   ;;  %s1276_s2 = inlined_call_operand.hbm [shape: f32[2,16,128], index: 2, kind: output, shape index: {}]  }
   0x1   :  { %9 = vsyncpa [#allocation3 + $0x1], 0 }
   0x2   :  { %10 = vsyncpa [#allocation6], 0 }
   0x3   :  { %12 = vsyncpa [#allocation6 + $0x1], 0 }
   0x4   :  { %13 = vsyncpa [#allocation4], 0 }
   0x5   :  { %15 = vsyncpa [#allocation4 + $0x1], 0  ;;  %s896_s9 = smov 0   ;;  %s898_s10 = smov 0  }
   0x6   :  { %s900_s11 = smov 0   ;;  %s902_s12 = smov 0  }
   0x7 LB: > { %s917_s13 = sadd.s32 4294967295, %s870_s12   ;;  %s631_s14 = sadd.s32 4294967294, %s870_s12   ;;  %s870_s12 = sphi %s902_s12, %s1292_s12   ;;  %s866_s11 = sphi %s900_s11, %s1291_s11   ;;  %s862_s10 = sphi %s898_s10, %s1290_s10   ;;  %s858_s9 = sphi %s896_s9, %s1289_s9  }
   0x8   : > { %s921_s15 = sadd.s32 1, %s870_s12   ;;  %s28_s16 = sadd.s32 1, %s866_s11 }
   0x9   : > { %s25_s17 = ssub.s32 %s870_s12, %s921_s15  ;;  %p35_p0 = scmp.ne.s32.totalorder %s866_s11, %s862_s10 }
   0xa   : > { %p26_p1 = scmp.eq.s32.totalorder %s25_s17, 0  ;;  %p36_p2 = scmp.eq.s32.totalorder %s870_s12, 0 }
   0xb   : > { %p41_p3 = scmp.ne.s32.totalorder %s862_s10, %s858_s9  ;;  %p42_p4 = scmp.eq.s32.totalorder %s917_s13, 0 }
   0xc   : > { %s933_s18 = scalar_select %p26_p1, %s866_s11, %s28_s16  }
   0xd   : > { %p935_p5 = por %p36_p2, %p35_p0  ;;  %p939_p6 = por %p42_p4, %p41_p3 }
   0xe   : > { %p91_p7 = scmp.eq.s32.totalorder %s917_s13, 1  ;;  %p97_p8 = scmp.eq.s32.totalorder %s631_s14, 1 }
   0xf   : > { %s1280_s20 = scalar_select %p939_p6, 1, 0 }
  0x10   : > { %p672_p10 = scmp.lt.s32.totalorder %s870_s12, 2  ;;  %p946_p11 = por %p91_p7, %p35_p0 }
  0x11   : > { %p950_p12 = por %p97_p8, %p41_p3  ;;  %s955_s23 = sand.u32 1, %s866_s11  }
  0x12   : > { %s1281_s21 = scalar_select %p946_p11, 1, 0 }
  0x13   : > { %s1282_s22 = scalar_select %p950_p12, 1, 0 }
  0x14   : > { %s652_s24 = sshll.u32 %s870_s12, 10  ;;  %s634_s25 = sshll.u32 %s955_s23, 6 }
  0x15   : > { %s962_s28 = scalar_lea.hbm %s1274_s0, %s652_s24  ;;  %s121_s29 = scalar_lea.vmem [#allocation2], %s634_s25 }
  0x16   : > { %s128_s30 = sshll.u32 %s121_s29, 4  ;;  %p966_p13 = pnand %p672_p10, %p935_p5  ;;  %s970_s30 = int_to_ptr.vmem [resolvable:$true] %s128_s30 }
  0x17   : > { %s118_s4 = scalar_lea.sflag [#allocation3], %s955_s23  ;;  %s746_s5 = scalar_lea.hbm %s962_s28, 1024 }
  0x18   : > { %p747_p0 = scmp.ne.s32.totalorder %s962_s28, %s746_s5  ;;  %p748_p1 = pneg %p966_p13 }
  0x19   : > { %s751_s8 = scalar_lea.hbm %s1274_s0, 2048  ;;  %p752_p4 = scmp.lt.s32.totalorder %s962_s28, %s1274_s0 }
  0x1a   : > { %p749_p2 = pnand %p748_p1, %p747_p0  ;;  %p753_p5 = scmp.lt.s32.totalorder %s751_s8, %s746_s5 }
  0x1c   : > { %p750_p3 = pneg %p749_p2  ;;  %p754_p7 = por %p753_p5, %p752_p4 }
  0x1e   : > { %p755_p8 = pnand %p754_p7, %p750_p3 }
  0x20   : > { %758 = shalt.err (!%p755_p8)
}
  0x21   : > { %s759_s17 = scalar_lea.vmem %s970_s30, 1024  ;;  %s872_s19 = smov [#allocation2]  }
  0x22   : > { %p760_p10 = scmp.ne.s32.totalorder %s970_s30, %s759_s17  ;;  %s764_s24 = sshll.u32 %s872_s19, 4  ;;  %s765_s24 = int_to_ptr.vmem [resolvable:$false] %s764_s24 }
  0x23   : > { %s766_s25 = scalar_lea.vmem %s765_s24, 2048  ;;  %p767_p9 = scmp.lt.s32.totalorder %s970_s30, %s765_s24 }
  0x24   : > { %p762_p0 = pnand %p760_p10, %p748_p1  ;;  %p768_p12 = scmp.lt.s32.totalorder %s766_s25, %s759_s17 }
  0x26   : > { %p763_p2 = pneg %p762_p0  ;;  %p769_p11 = por %p768_p12, %p767_p9 }
  0x28   : > { %p770_p4 = pnand %p769_p11, %p763_p2 }
  0x2a   : > { %773 = shalt.err (!%p770_p4)
}
  0x2b   : > { %s873_s26 = smov 128   ;;  %s874_s27 = smov 8  }
  0x2c   : > { %664 = dma.hbm_to_vmem [thread:$0]  (!%p966_p13), %s962_s28, 1024, %s970_s30, %s118_s4, %s873_s26, %s873_s26, %s874_s27  }
  0x2d   : > { %p640_p9 = scmp.ge.s32.totalorder %s870_s12, 1  ;;  %p157_p11 = scmp.lt.s32.totalorder %s870_s12, 3 }
  0x2e   : > { %s637_s29 = sshll.u32 %s955_s23, 4  ;;  %s653_s6 = sshll.u32 %s870_s12, 8 }
  0x2f   : > { %p1005_p12 = pnand %p640_p9, %p157_p11  ;;  %s142_s7 = scalar_lea.vmem [#allocation5], %s637_s29 }
  0x30   : > { %s149_s8 = sshll.u32 %s142_s7, 4  ;;  %s1013_s17 = scalar_lea.hbm %s1275_s1, %s653_s6  ;;  %s1015_s8 = int_to_ptr.vmem [resolvable:$true] %s149_s8 }
  0x31   : > { %s139_s28 = scalar_lea.sflag [#allocation6], %s955_s23  ;;  %s774_s30 = scalar_lea.hbm %s1013_s17, 256 }
  0x32   : > { %p775_p3 = scmp.ne.s32.totalorder %s1013_s17, %s774_s30  ;;  %s779_s24 = scalar_lea.hbm %s1275_s1, 512 }
  0x33   : > { %p780_p8 = scmp.lt.s32.totalorder %s1013_s17, %s1275_s1  ;;  %p781_p10 = scmp.lt.s32.totalorder %s779_s24, %s774_s30 }
  0x34   : > { %p777_p5 = pnand %p775_p3, %p748_p1 }
  0x35   : > { %p782_p0 = por %p781_p10, %p780_p8 }
  0x36   : > { %p778_p7 = pneg %p777_p5 }
  0x38   : > { %p783_p2 = pnand %p782_p0, %p778_p7 }
  0x3a   : > { %786 = shalt.err (!%p783_p2)
}
  0x3b   : > { %s787_s23 = scalar_lea.vmem %s1015_s8, 256  ;;  %s875_s6 = smov [#allocation5]  }
  0x3c   : > { %p788_p4 = scmp.ne.s32.totalorder %s1015_s8, %s787_s23  ;;  %s792_s7 = sshll.u32 %s875_s6, 4  ;;  %s793_s7 = int_to_ptr.vmem [resolvable:$false] %s792_s7 }
  0x3d   : > { %s794_s14 = scalar_lea.vmem %s793_s7, 512  ;;  %p795_p3 = scmp.lt.s32.totalorder %s1015_s8, %s793_s7 }
  0x3e   : > { %p790_p9 = pnand %p788_p4, %p748_p1  ;;  %p796_p5 = scmp.lt.s32.totalorder %s794_s14, %s787_s23 }
  0x40   : > { %p791_p11 = pneg %p790_p9  ;;  %p797_p6 = por %p796_p5, %p795_p3 }
  0x42   : > { %p798_p8 = pnand %p797_p6, %p791_p11 }
  0x44   : > { %801 = shalt.err (!%p798_p8)
}
  0x45   : > { %667 = dma.hbm_to_vmem [thread:$0]  (!%p966_p13), %s1013_s17, 256, %s1015_s8, %s139_s28, %s873_s26, %s873_s26, %s874_s27  }
  0x46   : > { %161 = sbr.rel (%p1005_p12) target bundleno = 647 (0x287), region = 28  ;;  %s1046_s16 = sand.u32 (!%p1005_p12), 1, %s862_s10  }
  0x47   : > { %s641_s30 = sshll.u32 (!%p1005_p12), %s1046_s16, 6  ;;  %s164_s4 = scalar_lea.sflag (!%p1005_p12), [#allocation3], %s1046_s16 }
  0x48   : > { %s167_s19 = scalar_lea.vmem (!%p1005_p12), [#allocation2], %s641_s30  ;;  %p1285_p6 = scmp.ne.s32.totalorder (!%p1005_p12), %s1280_s20, 0 }
  0x4b   : > { %845 = dma.done.wait (%p1285_p6), %s164_s4, 1024  }
  0x4c   : > { %847 = vsyncadd (%p1285_p6), %s164_s4, 4294966272  ;;  %s642_s3 = sshll.u32 %s1046_s16, 4  ;;  %s173_s26 = scalar_lea.sflag [#allocation6], %s1046_s16 }
  0x4d   : > { %s1058_s27 = scalar_lea.vmem [#allocation5], %s642_s3 }
  0x4e   : > { %849 = dma.done.wait (%p1285_p6), %s173_s26, 256  }
  0x4f   : > { %851 = vsyncadd (%p1285_p6), %s173_s26, 4294967040  ;;  %v202_v0 = vld [vmem:[%s167_s19] sm:$0xff]  ;;  %v204_v1 = vld [vmem:[%s167_s19 + $0x10] sm:$0xff]  ;;  %s876_s20 = smov 1   ;;  %s877_s5 = smov 127   ;;  %v230_v26 = vlaneseq }
  0x50   : > { %v206_v2 = vld [vmem:[%s167_s19 + $0x20] sm:$0xff]  ;;  %v212_v3 = vadd.f32 %v204_v1, %v202_v0  ;;  %v203_v4 = vld [vmem:[%s167_s19 + $0x8] sm:$0xff]  ;;  %v205_v5 = vld [vmem:[%s167_s19 + $0x18] sm:$0xff]  ;;  %s654_s8 = sshll.u32 %s917_s13, 8  ;;  %s201_s17 = scalar_lea.vmem [#allocation7], %s642_s3 }
  0x51   : > { %v208_v6 = vld [vmem:[%s167_s19 + $0x30] sm:$0xff]  ;;  %v207_v7 = vld [vmem:[%s167_s19 + $0x28] sm:$0xff]  ;;  %v215_v8 = vadd.f32 %v205_v5, %v203_v4  ;;  %v209_v10 = vld [vmem:[%s167_s19 + $0x38] sm:$0xff]  ;;  %v1092_v27 = vshrl.u32 %v230_v26, 7  ;;  %v1095_v29 = vand.u32 127, %v230_v26  ;;  %s535_s28 = sshll.u32 %s201_s17, 4  ;;  %s1229_s29 = scalar_lea.hbm %s1276_s2, %s654_s8  ;;  %s1231_s28 = int_to_ptr.vmem [resolvable:$true] %s535_s28 }
  0x52   : > { %v213_v9 = vadd.f32 %v212_v3, %v206_v2  ;;  %s522_s23 = scalar_lea.sflag [#allocation4], %s1046_s16  ;;  %s802_s13 = scalar_lea.vmem %s1231_s28, 256 }
  0x53   : > { %v216_v11 = vadd.f32 %v215_v8, %v207_v7  ;;  %v232_v28 = vadd.s32 8, %v1092_v27  ;;  %v373_v31 = vadd.s32 1, %v1095_v29  ;;  %v644_v32 = vadd.s32 4294967295, %v1095_v29  ;;  %p803_p13 = scmp.ne.s32.totalorder %s1231_s28, %s802_s13  ;;  %p1286_p1 = scmp.ne.s32.totalorder %s1281_s21, 0 }
  0x54   : > { %v214_v12 = vadd.f32 %v213_v9, %v208_v6  ;;  %v1103_v33 = vadd.s32 4294967295, %v1092_v27  ;;  %v243_v40 = vadd.s32 1, %v1092_v27  ;;  %vm307_vm7 = vcmp.lt.s32.totalorder %v1092_v27, 1  ;;  %s878_s6 = smov [#allocation7]  }
  0x55   : > { %v217_v13 = vadd.f32 %v216_v11, %v209_v10  ;;  %v1097_v30 = vadd.s32 1, %v232_v28  ;;  %vm374_vm0 = vcmp.lt.s32.totalorder %v373_v31, 15  ;;  %vm377_vm1 = vcmp.gt.s32.totalorder %v644_v32, 0  ;;  %p804_p12 = pnand %p803_p13, %p1286_p1  ;;  %s806_s7 = sshll.u32 %s878_s6, 4  ;;  %s807_s7 = int_to_ptr.vmem [resolvable:$false] %s806_s7 }
  0x56   : > { %v218_v14 = vadd.f32 0.4, %v214_v12  ;;  %v646_v34 = vadd.s32 4294967295, %v232_v28  ;;  %v375_v35 = vsel %vm374_vm0, %v373_v31, 15  ;;  %v378_v36 = vsel %vm377_vm1, %v644_v32, 0  ;;  %s808_s14 = scalar_lea.vmem %s807_s7, 512  ;;  %p809_p10 = scmp.lt.s32.totalorder %s1231_s28, %s807_s7 }
  0x57   : > { %v219_v15 = vadd.f32 0.4, %v217_v13  ;;  %vm383_vm2 = vcmp.lt.s32.totalorder %v1097_v30, 15  ;;  %v379_v38 = vsub.s32 %v375_v35, %v378_v36  ;;  %vm387_vm3 = vcmp.gt.s32.totalorder %v1103_v33, 0  ;;  %p805_p7 = pneg %p804_p12  ;;  %p810_p0 = scmp.lt.s32.totalorder %s808_s14, %s802_s13 }
  0x58   : > { %712 = vrcp.f32 %v218_v14  ;;  %v384_v37 = vsel %vm383_vm2, %v1097_v30, 15  ;;  %v388_v41 = vsel %vm387_vm3, %v1103_v33, 0  ;;  %vm248_vm6 = vcmp.lt.s32.totalorder %v1097_v30, 16 }
  0x59   : > { %714 = vrcp.f32 %v219_v15  ;;  %v392_v39 = vsub.s32 %v384_v37, %v646_v34  ;;  %v380_v42 = vadd.s32 1, %v379_v38  ;;  %v391_v44 = vsub.s32 %v243_v40, %v388_v41  ;;  %p811_p2 = por %p810_p0, %p809_p10 }
  0x5a   : > { %vm344_vm8 = vcmp.lt.s32.totalorder %v1092_v27, 7  ;;  %vm237_vm9 = vcmp.ge.s32.totalorder %v1103_v33, 0  ;;  %vm485_vm11 = vcmp.lt.s32.totalorder %v1095_v29, 16 }
  0x5b   : > { %v394_v43 = vadd.s32 1, %v392_v39  ;;  %v393_v46 = vadd.s32 1, %v391_v44  ;;  %p812_p4 = pnand %p811_p2, %p805_p7 }
  0x5d   : > { %v396_v45 = vmul.u32 %v394_v43, %v380_v42  ;;  %v395_v49 = vmul.u32 %v393_v46, %v380_v42 }
  0x5f   : > { %vm399_vm4 = vcmp.gt.s32.totalorder %v396_v45, 1  ;;  %vm397_vm5 = vcmp.gt.s32.totalorder %v395_v49, 1 }
  0x60   : > { %v1109_v50 = vsel %vm399_vm4, %v396_v45, 1  ;;  %v1112_v54 = vsel %vm397_vm5, %v395_v49, 1 }
  0x61   : > { %v402_v53 = vcvt.s32.f32 %v1109_v50  ;;  %v401_v57 = vcvt.s32.f32 %v1112_v54 }
  0x63   : > { %716 = vrcp.f32 %v402_v53 }
  0x64   : > { %718 = vrcp.f32 %v401_v57 }
  0x65   : > { %v713_v16 = vpop.eup %712 }
  0x66   : > { %v715_v17 = vpop.eup %714  ;;  %v1064_v18 = vmul.f32 %v713_v16, %v204_v1  ;;  %v1066_v19 = vmul.f32 %v713_v16, %v202_v0  ;;  %v1075_v23 = vmul.f32 %v713_v16, %v206_v2  ;;  %v1084_v25 = vmul.f32 %v713_v16, %v208_v6 }
  0x67   : > { %v1070_v20 = vmul.f32 %v715_v17, %v205_v5  ;;  %v223_v21 = vmul.f32 %v715_v17, %v203_v4  ;;  %v1073_v22 = vmul.f32 %v715_v17, %v207_v7  ;;  %v1082_v24 = vmul.f32 %v715_v17, %v209_v10 }
  0x68   : > { %255 = vrot.lane.b32.xlu1 %v1064_v18, %s876_s20  ;;  %251 = vrot.lane.b32.xlu0 %v1066_v19, %s876_s20 }
  0x6c   : > { %257 = vrot.lane.b32.xlu1 %v1070_v20, %s876_s20  ;;  %253 = vrot.lane.b32.xlu0 %v223_v21, %s876_s20 }
  0x70   : > { %261 = vrot.lane.b32.xlu1 %v1073_v22, %s876_s20  ;;  %259 = vrot.lane.b32.xlu0 %v1075_v23, %s876_s20 }
  0x74   : > { %277 = vrot.lane.b32.xlu1 %v223_v21, %s877_s5  ;;  %275 = vrot.lane.b32.xlu0 %v1066_v19, %s877_s5 }
  0x78   : > { %281 = vrot.lane.b32.xlu1 %v1070_v20, %s877_s5  ;;  %279 = vrot.lane.b32.xlu0 %v1064_v18, %s877_s5 }
  0x7c   : > { %265 = vrot.lane.b32.xlu1 %v1082_v24, %s876_s20  ;;  %263 = vrot.lane.b32.xlu0 %v1084_v25, %s876_s20 }
  0x80   : > { %285 = vrot.lane.b32.xlu1 %v1073_v22, %s877_s5  ;;  %283 = vrot.lane.b32.xlu0 %v1075_v23, %s877_s5 }
  0x84   : > { %289 = vrot.lane.b32.xlu1 %v1082_v24, %s877_s5  ;;  %287 = vrot.lane.b32.xlu0 %v1084_v25, %s877_s5 }
  0xda   : > { %v256_v47 = vpop.permute.xlu1 %255  ;;  %v252_v48 = vpop.permute.xlu0 %251 }
  0xdb   : > { %v267_v58 = vadd.f32 %v252_v48, %v1066_v19  ;;  %v269_v7 = vadd.f32 %v256_v47, %v1064_v18 }
  0xde   : > { %v258_v51 = vpop.permute.xlu1 %257  ;;  %v254_v52 = vpop.permute.xlu0 %253 }
  0xdf   : > { %v268_v59 = vadd.f32 %v254_v52, %v223_v21  ;;  %v270_v4 = vadd.f32 %v258_v51, %v1070_v20  ;;  %v1136_v21 = vpop.eup %716 }
  0xe0   : > { %v1155_v48 = vpop.eup %718 }
  0xe2   : > { %v262_v55 = vpop.permute.xlu1 %261  ;;  %v260_v56 = vpop.permute.xlu0 %259 }
  0xe3   : > { %v272_v31 = vadd.f32 %v262_v55, %v1073_v22  ;;  %v271_v34 = vadd.f32 %v260_v56, %v1075_v23 }
  0xe6   : > { %v278_v60 = vpop.permute.xlu1 %277  ;;  %v276_v61 = vpop.permute.xlu0 %275 }
  0xe7   : > { %v292_v62 = vadd.f32 %v278_v60, %v268_v59  ;;  %v291_v63 = vadd.f32 %v276_v61, %v267_v58 }
  0xe9   : > { %v303_v0 = vrot.slane %v292_v62, 7  ;;  %v340_v1 = vrot.slane %v292_v62, 1  ;;  %v299_v2 = vrot.slane %v291_v63, 7  ;;  %v336_v3 = vrot.slane %v291_v63, 1 }
  0xea   : > { %v282_v5 = vpop.permute.xlu1 %281  ;;  %v280_v6 = vpop.permute.xlu0 %279 }
  0xeb   : > { %v308_v8 = vsel %vm307_vm7, %v299_v2, %v303_v0  ;;  %v312_v9 = vsel %vm307_vm7, %v303_v0, %v299_v2  ;;  %v349_v10 = vsel %vm344_vm8, %v340_v1, %v336_v3  ;;  %v294_v13 = vadd.f32 %v282_v5, %v270_v4 }
  0xec   : > { %v329_v11 = vadd.f32 %v308_v8, %v292_v62  ;;  %v358_v12 = vsel %vm248_vm6, %v349_v10, 0.0  ;;  %v320_v14 = vsel %vm237_vm9, %v312_v9, 0.0  ;;  %v293_v15 = vadd.f32 %v280_v6, %v269_v7 }
  0xed   : > { %v304_v17 = vrot.slane %v294_v13, 7  ;;  %v341_v18 = vrot.slane %v294_v13, 1  ;;  %v328_v32 = vadd.f32 %v320_v14, %v291_v63  ;;  %v345_v42 = vsel %vm344_vm8, %v336_v3, %v340_v1 }
  0xee   : > { %v366_v16 = vadd.f32 %v358_v12, %v329_v11  ;;  %v266_v19 = vpop.permute.xlu1 %265  ;;  %v264_v20 = vpop.permute.xlu0 %263  ;;  %v300_v26 = vrot.slane %v293_v15, 7  ;;  %v337_v28 = vrot.slane %v293_v15, 1 }
  0xef   : > { %v365_v45 = vadd.f32 %v345_v42, %v328_v32  ;;  %v274_v49 = vadd.f32 %v266_v19, %v1082_v24  ;;  %v273_v58 = vadd.f32 %v264_v20, %v1084_v25 }
  0xf0   : > { %v309_v35 = vsel %vm307_vm7, %v300_v26, %v304_v17  ;;  %v313_v36 = vsel %vm307_vm7, %v304_v17, %v300_v26  ;;  %v350_v37 = vsel %vm344_vm8, %v341_v18, %v337_v28  ;;  %v1151_v23 = vmul.f32 %v1136_v21, %v366_v16 }
  0xf1   : > { %v322_v38 = vsel %vm237_vm9, %v313_v36, 0.0  ;;  %v331_v39 = vadd.f32 %v309_v35, %v294_v13  ;;  %v360_v40 = vsel %vm248_vm6, %v350_v37, 0.0  ;;  %v346_v56 = vsel %vm344_vm8, %v337_v28, %v341_v18 }
  0xf2   : > { %v286_v22 = vpop.permute.xlu1 %285  ;;  %v284_v41 = vpop.permute.xlu0 %283  ;;  %v330_v46 = vadd.f32 %v322_v38, %v293_v15  ;;  %v432_v61 = vadd.f32 1e-06, %v1151_v23  ;;  %v1178_v8 = vmul.f32 %v1155_v48, %v365_v45 }
  0xf3   : > { %v296_v43 = vadd.f32 %v286_v22, %v272_v31  ;;  %v295_v44 = vadd.f32 %v284_v41, %v271_v34  ;;  %v368_v47 = vadd.f32 %v360_v40, %v331_v39 }
  0xf4   : > { %v367_v2 = vadd.f32 %v346_v56, %v330_v46  ;;  %720 = vlog2.f32 %v432_v61  ;;  %v431_v28 = vadd.f32 1e-06, %v1178_v8 }
  0xf5   : > { %v305_v51 = vrot.slane %v296_v43, 7  ;;  %v342_v52 = vrot.slane %v296_v43, 1  ;;  %v301_v55 = vrot.slane %v295_v44, 7  ;;  %v338_v59 = vrot.slane %v295_v44, 1 }
  0xf6   : > { %v290_v60 = vpop.permute.xlu1 %289  ;;  %v288_v24 = vpop.permute.xlu0 %287  ;;  %v1167_v1 = vmul.f32 %v1136_v21, %v368_v47  ;;  %v1185_v19 = vmul.f32 %v1155_v48, %v367_v2  ;;  %v408_v20 = vadd.f32 %v368_v47, %v366_v16  ;;  %v405_v31 = vadd.f32 %v367_v2, %v365_v45 }
  0xf7   : > { %v310_v62 = vsel %vm307_vm7, %v301_v55, %v305_v51  ;;  %v314_v63 = vsel %vm307_vm7, %v305_v51, %v301_v55  ;;  %v298_v0 = vadd.f32 %v290_v60, %v274_v49  ;;  %v351_v4 = vsel %vm344_vm8, %v342_v52, %v338_v59 }
  0xf8   : > { %v324_v3 = vsel %vm237_vm9, %v314_v63, 0.0  ;;  %v333_v25 = vadd.f32 %v310_v62, %v296_v43  ;;  %v347_v6 = vsel %vm344_vm8, %v338_v59, %v342_v52  ;;  %v362_v7 = vsel %vm248_vm6, %v351_v4, 0.0 }
  0xf9   : > { %v332_v5 = vadd.f32 %v324_v3, %v295_v44  ;;  %v306_v10 = vrot.slane %v298_v0, 7  ;;  %v343_v11 = vrot.slane %v298_v0, 1  ;;  %v297_v12 = vadd.f32 %v288_v24, %v273_v58 }
  0xfa   : > { %v370_v9 = vadd.f32 %v362_v7, %v333_v25  ;;  %v434_v14 = vadd.f32 1e-06, %v1167_v1  ;;  %v433_v22 = vadd.f32 1e-06, %v1185_v19  ;;  %v426_v54 = vsub.f32 0.0, %v1167_v1 }
  0xfb   : > { %v369_v13 = vadd.f32 %v347_v6, %v332_v5  ;;  %v302_v15 = vrot.slane %v297_v12, 7  ;;  %v339_v17 = vrot.slane %v297_v12, 1  ;;  %v425_v2 = vsub.f32 0.0, %v1185_v19 }
  0xfc   : > { %v1182_v18 = vmul.f32 %v1136_v21, %v370_v9  ;;  %722 = vlog2.f32 %v434_v14  ;;  %v409_v38 = vadd.f32 %v408_v20, %v370_v9  ;;  %v424_v25 = vsub.f32 0.0, %v1151_v23 }
  0xfd   : > { %v1188_v26 = vmul.f32 %v1155_v48, %v369_v13  ;;  %v311_v32 = vsel %vm307_vm7, %v302_v15, %v306_v10  ;;  %v315_v34 = vsel %vm307_vm7, %v306_v10, %v302_v15  ;;  %v352_v35 = vsel %vm344_vm8, %v343_v11, %v339_v17 }
  0xfe   : > { %v326_v36 = vsel %vm237_vm9, %v315_v34, 0.0  ;;  %v335_v16 = vadd.f32 %v311_v32, %v298_v0  ;;  %v364_v37 = vsel %vm248_vm6, %v352_v35, 0.0  ;;  %v436_v40 = vadd.f32 1e-06, %v1182_v18 }
  0xff   : > { %v334_v39 = vadd.f32 %v326_v36, %v297_v12  ;;  %v348_v41 = vsel %vm344_vm8, %v339_v17, %v343_v11  ;;  %v435_v43 = vadd.f32 1e-06, %v1188_v26  ;;  %724 = vlog2.f32 %v431_v28 }
 0x100   : > { %v372_v42 = vadd.f32 %v364_v37, %v335_v16  ;;  %v406_v33 = vadd.f32 %v405_v31, %v369_v13  ;;  %726 = vlog2.f32 %v436_v40  ;;  %v428_v4 = vsub.f32 0.0, %v1182_v18  ;;  %v211_v16 = vld [vmem:[%s1058_s27 + $0x8] sm:$0xff] }
 0x101   : > { %v371_v44 = vadd.f32 %v348_v41, %v334_v39  ;;  %728 = vlog2.f32 %v433_v22  ;;  %v721_v59 = vpop.eup %720  ;;  %v423_v7 = vsub.f32 0.0, %v1178_v8  ;;  %v427_v9 = vsub.f32 0.0, %v1188_v26  ;;  %v210_v39 = vld [vmem:[%s1058_s27] sm:$0xff] }
 0x102   : > { %v410_v45 = vadd.f32 %v409_v38, %v372_v42  ;;  %v420_v30 = vmul.f32 %v1136_v21, %v372_v42  ;;  %730 = vlog2.f32 %v435_v43  ;;  %v442_v0 = vmul.f32 0.6931472, %v721_v59 }
 0x103   : > { %v407_v46 = vadd.f32 %v406_v33, %v371_v44  ;;  %v419_v47 = vmul.f32 %v1155_v48, %v371_v44  ;;  %vm482_vm10 = vcmp.eq.f32.partialorder %v211_v16, 0.0  ;;  %vm481_vm12 = vcmp.eq.f32.partialorder %v210_v39, 0.0 }
 0x104   : > { %v412_v49 = vsub.f32 %v402_v53, %v410_v45  ;;  %v438_v27 = vadd.f32 1e-06, %v420_v30  ;;  %v430_v11 = vsub.f32 0.0, %v420_v30  ;;  %v456_v13 = vmul.f32 %v442_v0, %v424_v25 }
 0x105   : > { %v411_v51 = vsub.f32 %v401_v57, %v407_v46  ;;  %v437_v52 = vadd.f32 1e-06, %v419_v47  ;;  %v429_v15 = vsub.f32 0.0, %v419_v47 }
 0x106   : > { %v422_v55 = vmul.f32 %v1136_v21, %v412_v49  ;;  %732 = vlog2.f32 %v438_v27 }
 0x107   : > { %v421_v56 = vmul.f32 %v1155_v48, %v411_v51  ;;  %734 = vlog2.f32 %v437_v52 }
 0x108   : > { %v470_v58 = vadd.f32 1e-06, %v422_v55 }
 0x109   : > { %v469_v60 = vadd.f32 1e-06, %v421_v56  ;;  %v723_v61 = vpop.eup %722 }
 0x10a   : > { %736 = vlog2.f32 %v470_v58  ;;  %v446_v53 = vmul.f32 0.6931472, %v723_v61 }
 0x10b   : > { %738 = vlog2.f32 %v469_v60 }
 0x10c   : > { %v725_v62 = vpop.eup %724  ;;  %v458_v5 = vmul.f32 %v446_v53, %v426_v54 }
 0x10d   : > { %v727_v50 = vpop.eup %726  ;;  %v440_v48 = vmul.f32 0.6931472, %v725_v62 }
 0x10e   : > { %v729_v63 = vpop.eup %728  ;;  %v450_v24 = vmul.f32 0.6931472, %v727_v50  ;;  %v466_v18 = vadd.f32 %v458_v5, %v456_v13 }
 0x10f   : > { %v731_v57 = vpop.eup %730  ;;  %v444_v21 = vmul.f32 0.6931472, %v729_v63  ;;  %v455_v19 = vmul.f32 %v440_v48, %v423_v7 }
 0x110   : > { %v448_v3 = vmul.f32 0.6931472, %v731_v57  ;;  %v460_v14 = vmul.f32 %v450_v24, %v428_v4 }
 0x111   : > { %v457_v10 = vmul.f32 %v444_v21, %v425_v2 }
 0x112   : > { %v459_v23 = vmul.f32 %v448_v3, %v427_v9  ;;  %v467_v34 = vadd.f32 %v466_v18, %v460_v14 }
 0x113   : > { %v733_v6 = vpop.eup %732  ;;  %v463_v32 = vadd.f32 %v457_v10, %v455_v19 }
 0x114   : > { %v735_v1 = vpop.eup %734  ;;  %v454_v12 = vmul.f32 0.6931472, %v733_v6 }
 0x115   : > { %v452_v17 = vmul.f32 0.6931472, %v735_v1  ;;  %v464_v35 = vadd.f32 %v463_v32, %v459_v23 }
 0x116   : > { %v462_v20 = vmul.f32 %v454_v12, %v430_v11 }
 0x117   : > { %v737_v28 = vpop.eup %736  ;;  %v461_v31 = vmul.f32 %v452_v17, %v429_v15 }
 0x118   : > { %v739_v8 = vpop.eup %738  ;;  %v474_v26 = vmul.f32 0.6931472, %v737_v28  ;;  %v468_v37 = vadd.f32 %v467_v34, %v462_v20 }
 0x119   : > { %v472_v36 = vmul.f32 0.6931472, %v739_v8  ;;  %v465_v40 = vadd.f32 %v464_v35, %v461_v31 }
 0x11a   : > { %v476_v38 = vmul.f32 %v474_v26, %v422_v55 }
 0x11b   : > { %v475_v22 = vmul.f32 %v472_v36, %v421_v56 }
 0x11c   : > { %v478_v41 = vsub.f32 %v468_v37, %v476_v38 }
 0x11d   : > { %v477_v42 = vsub.f32 %v465_v40, %v475_v22 }
 0x11e   : > { %v480_v43 = vmul.f32 0.6213349, %v478_v41 }
 0x11f   : > { %v479_v33 = vmul.f32 0.6213349, %v477_v42 }
 0x120   : > { %v484_v44 = vsel %vm482_vm10, -10000.0, %v480_v43 }
 0x121   : > { %v487_v45 = vsel %vm485_vm11, %v484_v44, -1e+30  ;;  %v483_v30 = vsel %vm481_vm12, -10000.0, %v479_v33 }
 0x122   : > { %490 = vmax.xlane.f32.xlu1 %v487_v45  ;;  %v486_v46 = vsel %vm485_vm11, %v483_v30, -1e+30 }
 0x123   : > { %488 = vmax.xlane.f32.xlu0 %v486_v46 }
 0x1ab   : > { %v491_v47 = vpop.xlane.xlu1 %490 }
 0x1ac   : > { %v489_v49 = vpop.xlane.xlu0 %488 }
 0x1ad   : > { %v492_v27 = vmax.f32 %v489_v49, %v491_v47 }
 0x1af   : > { %v493_v51 = vrot.slane %v492_v27, 4 }
 0x1b1   : > { %v494_v52 = vmax.f32 %v492_v27, %v493_v51 }
 0x1b3   : > { %v495_v55 = vrot.slane %v494_v52, 2 }
 0x1b5   : > { %v496_v56 = vmax.f32 %v494_v52, %v495_v55 }
 0x1b7   : > { %v497_v58 = vrot.slane %v496_v56, 1 }
 0x1b9   : > { %v498_v59 = vmax.f32 %v496_v56, %v497_v58 }
 0x1bb   : > { %v499_v60 = vsub.f32 %v486_v46, %v498_v59  ;;  %v500_v61 = vsub.f32 %v487_v45, %v498_v59 }
 0x1bd   : > { %v501_v29 = vmul.f32 1.442695, %v499_v60  ;;  %v503_v62 = vmul.f32 1.442695, %v500_v61 }
 0x1bf   : > { %740 = vpow2.f32 %v501_v29 }
 0x1c0   : > { %742 = vpow2.f32 %v503_v62 }
 0x1cc   : > { %v741_v50 = vpop.eup %740 }
 0x1cd   : > { %505 = vadd.xlane.f32.xlu0 %v741_v50  ;;  %v743_v53 = vpop.eup %742 }
 0x1d1   : > { %507 = vadd.xlane.f32.xlu0 %v743_v53 }
 0x256   : > { %v506_v63 = vpop.xlane.xlu0 %505 }
 0x25a   : > { %v508_v54 = vpop.xlane.xlu0 %507 }
 0x25b   : > { %v509_v57 = vadd.f32 %v508_v54, %v506_v63 }
 0x25d   : > { %v510_v0 = vrot.slane %v509_v57, 4 }
 0x25f   : > { %v511_v24 = vadd.f32 %v510_v0, %v509_v57 }
 0x261   : > { %v512_v21 = vrot.slane %v511_v24, 2 }
 0x263   : > { %v513_v2 = vadd.f32 %v512_v21, %v511_v24 }
 0x265   : > { %v514_v48 = vrot.slane %v513_v2, 1 }
 0x267   : > { %v515_v3 = vadd.f32 %v514_v48, %v513_v2 }
 0x269   : > { %744 = vrcp.f32 %v515_v3 }
 0x276   : > { %v745_v25 = vpop.eup %744 }
 0x277   : > { %v517_v4 = vmul.f32 %v745_v25, %v741_v50  ;;  %v518_v5 = vmul.f32 %v745_v25, %v743_v53 }
 0x279   : > { %519 = vst [vmem:[%s201_s17] sm:$0xff] %v517_v4  ;;  %520 = vst [vmem:[%s201_s17 + $0x8] sm:$0xff] %v518_v5 }
 0x27a   : > { %815 = shalt.err (!%p812_p4)
}
 0x27b   : > { %s816_s30 = scalar_lea.hbm %s1229_s29, 256  ;;  %s820_s3 = scalar_lea.hbm %s1276_s2, 512 }
 0x27c   : > { %p817_p9 = scmp.ne.s32.totalorder %s1229_s29, %s816_s30  ;;  %p821_p5 = scmp.lt.s32.totalorder %s1229_s29, %s1276_s2 }
 0x27d   : > { %p822_p8 = scmp.lt.s32.totalorder %s820_s3, %s816_s30 }
 0x27e   : > { %p818_p11 = pnand %p817_p9, %p1286_p1 }
 0x27f   : > { %p823_p6 = por %p822_p8, %p821_p5 }
 0x280   : > { %p819_p3 = pneg %p818_p11 }
 0x282   : > { %p824_p13 = pnand %p823_p6, %p819_p3 }
 0x284   : > { %827 = shalt.err (!%p824_p13)
}
 0x285   : > { %s879_s20 = smov 128   ;;  %s880_s5 = smov 8  }
 0x286   : > { %659 = dma.vmem_to_hbm [thread:$0]  (%p1286_p1), %s1231_s28, 256, %s1229_s29, %s522_s23, %s879_s20, %s879_s20, %s880_s5  }
 0x287 PF: > { %s550_s8 = sand.u32 1, %s858_s9   ;;  %p1287_p12 = scmp.ne.s32.totalorder %s1282_s22, 0 }
 0x288   : > { %p1288_p7 = scmp.ge.s32.totalorder %s870_s12, 2  ;;  %s551_s17 = scalar_lea.sflag [#allocation4], %s550_s8 }
 0x28a   : > { %p669_p10 = pnand %p1288_p7, %p1287_p12 }
 0x28c   : > { %p670_p0 = pneg %p669_p10 }
 0x28e   : > { %853 = dma.done.wait (%p670_p0), %s551_s17, 256  }
 0x28f   : > { %855 = vsyncadd (%p670_p0), %s551_s17, 4294967040  ;;  %p18_p2 = scmp.ge.s32.totalorder %s921_s15, 4   ;;  %s1289_s9 = smov %s862_s10 }
 0x290   : > { %s1290_s10 = smov %s866_s11  ;;  %s1291_s11 = smov %s933_s18 }
 0x291   : > { %s1292_s12 = smov %s921_s15  ;;  %20 = sbr.rel (!%p18_p2) target bundleno = 7 (0x7), region = 86 }
 0x296   :  { %556 = vsyncpa [#allocation3], 1 }
 0x297   :  { %558 = vsyncpa [#allocation3 + $0x1], 1 }
 0x298   :  { %559 = vsyncpa [#allocation6], 1 }
 0x299   :  { %561 = vsyncpa [#allocation6 + $0x1], 1 }
 0x29a   :  { %562 = vsyncpa [#allocation4], 1 }
 0x29b   :  { %564 = vsyncpa [#allocation4 + $0x1], 1 }

</bundles_post_ra>
